<compile_context>
chip_gen: v7x
topology: tpu7x:2x2x1
jax: 0.10.0
libtpu: 0.0.40
codegen_flags: <defaults>
</compile_context>

<pallas_src>
import functools

import jax
import jax.numpy as jnp
import numpy as np
from jax.experimental import pallas as pl
from jax.experimental.pallas import tpu as pltpu


def _icarl_kernel(x_ref, old_ref, lab_ref, out_ref, *,
                  n_classes, n_old, ignore_index, bkg, hw, tile_pix,
                  blocks_per_split, need_mask):
    k = pl.program_id(2)

    @pl.when(k == 0)
    def _():
        out_ref[...] = jnp.zeros_like(out_ref)

    x = x_ref[...]          # (C, T)      logits, native dtype (bf16 ok on v6e/v7x)
    old = old_ref[...]      # (C_old, T)  old-model probs, native dtype
    lab = lab_ref[...]      # (1, T)      int32 labels
    zero = jnp.zeros((), dtype=x.dtype)

    # Stable BCE-with-logits softplus term:  max(x,0) + log1p(exp(-|x|)).
    sp = jnp.maximum(x, zero) + jnp.log1p(jnp.exp(-jnp.abs(x)))

    # One-hot contribution, fused into a single select:
    # only labels whose class row keeps the one-hot target may hit; all other
    # labels (including ignore_index) are remapped to n_classes (never matches).
    lab_new = jnp.where(lab == ignore_index, n_classes, lab)
    if bkg:
        keep = (lab_new == 0) | (lab_new >= n_old)
    else:
        keep = lab_new >= n_old
    eff_lab = jnp.where(keep, lab_new, n_classes)                   # (1, T)
    ch = jax.lax.broadcasted_iota(jnp.int32, x.shape, 0)            # (C, T)
    elem = sp - jnp.where(ch == eff_lab, x, zero)                   # (C, T)

    # Per-pixel class sum accumulated in f32.
    row = jnp.sum(elem.astype(jnp.float32), axis=0, keepdims=True)  # (1, T)

    # Old-model probability term over the sublane-aligned rows [0, n_old);
    # for bkg=True subtract the row-0 product instead of slicing at offset 1.
    prod = (x[:n_old] * old).astype(jnp.float32)                    # (C_old, T)
    old_sum = jnp.sum(prod, axis=0, keepdims=True)                  # (1, T)
    if bkg:
        old_sum = old_sum - prod[0:1]
    row = row - old_sum

    # Mask lanes past the true pixel count (partial last block / over-count
    # steps from the pixel-split).  Select, so garbage/NaN tails are harmless.
    if need_mask:
        p = pl.program_id(1)
        pix = (p * blocks_per_split + k) * tile_pix + jax.lax.broadcasted_iota(
            jnp.int32, (1, tile_pix), 1)
        row = jnp.where(pix < hw, row, 0.0)

    # Lane-dense vector accumulation; cross-lane reduce happens once in JAX.
    out_ref[...] += row


def icarl_loss_pallas(inputs, targets, output_old, *, ignore_index=255,
                      bkg=False, reduction='mean',
                      vmem_budget_bytes=20 * 1024 * 1024):
    """Pallas implementation of IcarlLoss.forward (reduction in {'mean','sum'})."""
    # TODO(synk): reduction='none' (per-pixel [N,H,W] map) is not wired through
    # the accumulating out_spec; only 'mean' / 'sum' are implemented here.
    assert reduction in ('mean', 'sum')
    N, C, H, W = inputs.shape
    C_old = output_old.shape[1]
    assert 1 <= C_old <= C
    HW = H * W
    R = N * HW

    # Free reshapes only — keep native channel-major layout and native dtypes.
    x = inputs.reshape(N, C, HW)
    old = output_old.reshape(N, C_old, HW)
    lab = targets.reshape(N, 1, HW).astype(jnp.int32)

    # Pixel-tile sizing: per-step HBM bytes scale with the class counts, so
    # size the tile from a VMEM budget covering the double-buffered I/O plus
    # the in-kernel f32 temporaries (keeps v7x's 64 MiB / v5e's scoped VMEM
    # safe while still moving several MB per grid step).
    io_per_pixel = (C * inputs.dtype.itemsize
                    + C_old * output_old.dtype.itemsize + 4)
    live_per_pixel = 2 * io_per_pixel + 8 * C * 4 + 4 * C_old * 4
    tile = max(128, (vmem_budget_bytes // live_per_pixel) // 128 * 128)
    tile = min(tile, pl.cdiv(HW, 128) * 128)

    num_blocks = pl.cdiv(HW, tile)
    # v7x megacore: when N == 1 only a pixel split can feed the 2nd TensorCore.
    if N == 1 and num_blocks == 1 and HW > 128:
        tile = pl.cdiv(pl.cdiv(HW, 2), 128) * 128
        num_blocks = pl.cdiv(HW, tile)
    P = 2 if (N == 1 and num_blocks >= 2) else 1
    K = pl.cdiv(num_blocks, P)
    # Mask needed if the grid over-covers the pixel axis (partial last block
    # and/or P*K > num_blocks over-count steps).
    need_mask = (P * K * tile) != HW

    def pix_block(p, k):
        b = p * K + k
        if P * K != num_blocks:
            b = jnp.minimum(b, num_blocks - 1)   # clamp over-count steps
        return b

    kernel = functools.partial(
        _icarl_kernel,
        n_classes=C, n_old=C_old, ignore_index=ignore_index, bkg=bkg,
        hw=HW, tile_pix=tile, blocks_per_split=K, need_mask=need_mask)

    partials = pl.pallas_call(
        kernel,
        out_shape=jax.ShapeDtypeStruct((N, P, tile), jnp.float32),
        grid_spec=pltpu.PrefetchScalarGridSpec(
            num_scalar_prefetch=0,
            grid=(N, P, K),
            in_specs=[
                pl.BlockSpec((None, C, tile),
                             lambda n, p, k: (n, 0, pix_block(p, k))),
                pl.BlockSpec((None, C_old, tile),
                             lambda n, p, k: (n, 0, pix_block(p, k))),
                pl.BlockSpec((None, 1, tile),
                             lambda n, p, k: (n, 0, pix_block(p, k))),
            ],
            out_specs=pl.BlockSpec((None, 1, tile),
                                   lambda n, p, k: (n, p, 0)),
        ),
        compiler_params=pltpu.CompilerParams(
            dimension_semantics=("parallel", "parallel", "arbitrary"),
            vmem_limit_bytes=32 * 1024 * 1024),
    )(x, old, lab)

    total = jnp.sum(partials, dtype=jnp.float32)
    if reduction == 'mean':
        return total / jnp.float32(R)
    return total


def icarl_loss_ref(inputs, targets, output_old, *, ignore_index=255,
                   bkg=False, reduction='mean'):
    """Pure-JAX reference mirroring the PyTorch forward exactly."""
    N, C, H, W = inputs.shape
    labels_new = jnp.where(targets != ignore_index, targets, C)
    t = jax.nn.one_hot(labels_new, C + 1, dtype=jnp.float32)   # N,H,W,C+1
    t = jnp.transpose(t, (0, 3, 1, 2))[:, :C]
    if bkg:
        t = t.at[:, 1:output_old.shape[1]].set(output_old[:, 1:].astype(jnp.float32))
    else:
        t = t.at[:, :output_old.shape[1]].set(output_old.astype(jnp.float32))
    x = inputs.astype(jnp.float32)
    loss = jnp.maximum(x, 0.0) - x * t + jnp.log1p(jnp.exp(-jnp.abs(x)))
    loss = loss.sum(axis=1)
    if reduction == 'mean':
        return loss.mean()
    elif reduction == 'sum':
        return loss.sum()
    return loss


if __name__ == "__main__":
    key = jax.random.PRNGKey(0)
    k1, k2, k3, k4 = jax.random.split(key, 4)

    N, C, H, W = 2, 6, 16, 16        # new-model classes
    C_old = 4                        # old-model classes
    ignore_index = 255

    inputs = jax.random.normal(k1, (N, C, H, W), dtype=jnp.float32)
    targets = jax.random.randint(k2, (N, H, W), 0, C, dtype=jnp.int32)
    ignore_mask = jax.random.uniform(k3, (N, H, W)) < 0.1
    targets = jnp.where(ignore_mask, ignore_index, targets)
    output_old = jax.nn.sigmoid(
        jax.random.normal(k4, (N, C_old, H, W), dtype=jnp.float32))

    for bkg, reduction in ((False, 'mean'), (True, 'mean'), (False, 'sum')):
        got = jax.block_until_ready(
            icarl_loss_pallas(inputs, targets, output_old,
                              ignore_index=ignore_index, bkg=bkg,
                              reduction=reduction))
        want = jax.block_until_ready(
            icarl_loss_ref(inputs, targets, output_old,
                           ignore_index=ignore_index, bkg=bkg,
                           reduction=reduction))
        np.testing.assert_allclose(np.asarray(got), np.asarray(want),
                                   rtol=1e-5, atol=1e-5)

    # N == 1 case exercising the megacore pixel-split path with an odd block
    # count (clamped over-count step) and a partial last block (lane mask).
    N1, H1, W1 = 1, 18, 18           # HW = 324 -> 3 blocks of 128 -> P=2, K=2
    x1 = jax.random.normal(k1, (N1, C, H1, W1), dtype=jnp.float32)
    t1 = jax.random.randint(k2, (N1, H1, W1), 0, C, dtype=jnp.int32)
    t1 = jnp.where(jax.random.uniform(k3, (N1, H1, W1)) < 0.1, ignore_index, t1)
    o1 = jax.nn.sigmoid(
        jax.random.normal(k4, (N1, C_old, H1, W1), dtype=jnp.float32))
    got = jax.block_until_ready(
        icarl_loss_pallas(x1, t1, o1, ignore_index=ignore_index, bkg=True,
                          reduction='mean', vmem_budget_bytes=1))
    want = jax.block_until_ready(
        icarl_loss_ref(x1, t1, o1, ignore_index=ignore_index, bkg=True,
                       reduction='mean'))
    np.testing.assert_allclose(np.asarray(got), np.asarray(want),
                               rtol=1e-5, atol=1e-5)

    print("KERNEL_OK")
</pallas_src>

<mosaic_0001>
module attributes {stable_mosaic.version = 11 : i64} {
  func.func @_icarl_kernel(%arg0: i32, %arg1: i32, %arg2: i32, %arg3: memref<1x6x256xf32, #tpu.memory_space<vmem>>, %arg4: memref<1x4x256xf32, #tpu.memory_space<vmem>>, %arg5: memref<1x1x256xi32, #tpu.memory_space<vmem>>, %arg6: memref<1x1x256xf32, #tpu.memory_space<vmem>>) attributes {dimension_semantics = [#tpu.dimension_semantics<parallel>, #tpu.dimension_semantics<parallel>, #tpu.dimension_semantics<arbitrary>], iteration_bounds = array<i64: 2, 1, 1>, scalar_prefetch = 0 : i64, scratch_operands = 0 : i64, tpu.core_type = #tpu.core_type<tc>, window_params = [{transform_indices = @transform_0, window_bounds = array<i64: 1, 6, 256>}, {transform_indices = @transform_1, window_bounds = array<i64: 1, 4, 256>}, {transform_indices = @transform_2, window_bounds = array<i64: 1, 1, 256>}, {transform_indices = @transform_3, window_bounds = array<i64: 1, 1, 256>}]} {
    %c0_i32 = arith.constant 0 : i32
    %0 = arith.cmpi eq, %arg2, %c0_i32 : i32
    %1 = arith.extui %0 : i1 to i32
    %c0_i32_0 = arith.constant 0 : i32
    %2 = arith.cmpi ne, %1, %c0_i32_0 : i32
    scf.if %2 {
      %cst_20 = arith.constant 0.000000e+00 : f32
      %44 = vector.broadcast %cst_20 : f32 to vector<1x256xf32>
      %c0_21 = arith.constant 0 : index
      %c0_22 = arith.constant 0 : index
      %c0_23 = arith.constant 0 : index
      %45 = vector.load %arg6[%c0_21, %c0_22, %c0_23] : memref<1x1x256xf32, #tpu.memory_space<vmem>>, vector<1x1x256xf32>
      %46 = vector.shape_cast %45 : vector<1x1x256xf32> to vector<1x256xf32>
      %47 = vector.shape_cast %44 : vector<1x256xf32> to vector<1x1x256xf32>
      tpu.vector_store %arg6[%c0_21, %c0_22, %c0_23], %47 {strides = array<i32>} : memref<1x1x256xf32, #tpu.memory_space<vmem>>, vector<1x1x256xf32>,
    } else {
    }
    %c0 = arith.constant 0 : index
    %c0_1 = arith.constant 0 : index
    %c0_2 = arith.constant 0 : index
    %3 = vector.load %arg3[%c0, %c0_1, %c0_2] : memref<1x6x256xf32, #tpu.memory_space<vmem>>, vector<1x6x256xf32>
    %4 = vector.shape_cast %3 : vector<1x6x256xf32> to vector<6x256xf32>
    %c0_3 = arith.constant 0 : index
    %c0_4 = arith.constant 0 : index
    %c0_5 = arith.constant 0 : index
    %5 = vector.load %arg4[%c0_3, %c0_4, %c0_5] : memref<1x4x256xf32, #tpu.memory_space<vmem>>, vector<1x4x256xf32>
    %6 = vector.shape_cast %5 : vector<1x4x256xf32> to vector<4x256xf32>
    %c0_6 = arith.constant 0 : index
    %c0_7 = arith.constant 0 : index
    %c0_8 = arith.constant 0 : index
    %7 = vector.load %arg5[%c0_6, %c0_7, %c0_8] : memref<1x1x256xi32, #tpu.memory_space<vmem>>, vector<1x1x256xi32>
    %8 = vector.shape_cast %7 : vector<1x1x256xi32> to vector<1x256xi32>
    %cst = arith.constant 0.000000e+00 : f32
    %9 = vector.broadcast %cst : f32 to vector<6x256xf32>
    %10 = arith.maximumf %4, %9 : vector<6x256xf32>
    %11 = math.absf %4 : vector<6x256xf32>
    %cst_9 = arith.constant 0.000000e+00 : f32
    %12 = vector.broadcast %cst_9 : f32 to vector<6x256xf32>
    %13 = arith.subf %12, %11 : vector<6x256xf32>
    %14 = math.exp %13 : vector<6x256xf32>
    %15 = math.log1p %14 : vector<6x256xf32>
    %16 = arith.addf %10, %15 : vector<6x256xf32>
    %c255_i32 = arith.constant 255 : i32
    %17 = vector.broadcast %c255_i32 : i32 to vector<1x256xi32>
    %18 = arith.cmpi eq, %8, %17 : vector<1x256xi32>
    %c6_i32 = arith.constant 6 : i32
    %19 = vector.broadcast %c6_i32 : i32 to vector<1x256xi32>
    %20 = arith.select %18, %19, %8 : vector<1x256xi1>, vector<1x256xi32>
    %c4_i32 = arith.constant 4 : i32
    %21 = vector.broadcast %c4_i32 : i32 to vector<1x256xi32>
    %22 = arith.cmpi sge, %20, %21 : vector<1x256xi32>
    %c6_i32_10 = arith.constant 6 : i32
    %23 = vector.broadcast %c6_i32_10 : i32 to vector<1x256xi32>
    %24 = arith.select %22, %20, %23 : vector<1x256xi1>, vector<1x256xi32>
    %25 = tpu.iota {dimensions = array<i32: 0>} : vector<6x256xi32>
    %26 = vector.broadcast %24 : vector<1x256xi32> to vector<6x256xi32>
    %27 = arith.cmpi eq, %25, %26 : vector<6x256xi32>
    %cst_11 = arith.constant 0.000000e+00 : f32
    %28 = vector.broadcast %cst_11 : f32 to vector<6x256xf32>
    %29 = arith.select %27, %4, %28 : vector<6x256xi1>, vector<6x256xf32>
    %30 = arith.subf %16, %29 : vector<6x256xf32>
    %cst_12 = arith.constant dense<0.000000e+00> : vector<256xf32>
    %31 = vector.multi_reduction <add>, %30, %cst_12 [0] : vector<6x256xf32> to vector<256xf32>
    %32 = vector.shape_cast %31 : vector<256xf32> to vector<1x256xf32>
    %33 = vector.extract_strided_slice %4 {offsets = [0, 0], sizes = [4, 256], strides = [1, 1]} : vector<6x256xf32> to vector<4x256xf32>
    %34 = arith.mulf %33, %6 : vector<4x256xf32>
    %cst_13 = arith.constant dense<0.000000e+00> : vector<256xf32>
    %35 = vector.multi_reduction <add>, %34, %cst_13 [0] : vector<4x256xf32> to vector<256xf32>
    %36 = vector.shape_cast %35 : vector<256xf32> to vector<1x256xf32>
    %37 = arith.subf %32, %36 : vector<1x256xf32>
    %c0_14 = arith.constant 0 : index
    %c0_15 = arith.constant 0 : index
    %c0_16 = arith.constant 0 : index
    %38 = vector.load %arg6[%c0_14, %c0_15, %c0_16] : memref<1x1x256xf32, #tpu.memory_space<vmem>>, vector<1x1x256xf32>
    %39 = vector.shape_cast %38 : vector<1x1x256xf32> to vector<1x256xf32>
    %40 = arith.addf %39, %37 : vector<1x256xf32>
    %c0_17 = arith.constant 0 : index
    %c0_18 = arith.constant 0 : index
    %c0_19 = arith.constant 0 : index
    %41 = vector.load %arg6[%c0_17, %c0_18, %c0_19] : memref<1x1x256xf32, #tpu.memory_space<vmem>>, vector<1x1x256xf32>
    %42 = vector.shape_cast %41 : vector<1x1x256xf32> to vector<1x256xf32>
    %43 = vector.shape_cast %40 : vector<1x256xf32> to vector<1x1x256xf32>
    tpu.vector_store %arg6[%c0_17, %c0_18, %c0_19], %43 {strides = array<i32>} : memref<1x1x256xf32, #tpu.memory_space<vmem>>, vector<1x1x256xf32>,
    return
  }
  func.func @transform_0(%arg0: i32, %arg1: i32, %arg2: i32) -> (i32, i32, i32) {
    %c1_i32 = arith.constant 1 : i32
    %0 = arith.muli %arg1, %c1_i32 : i32
    %1 = arith.addi %0, %arg2 : i32
    %c0_i32 = arith.constant 0 : i32
    %c0_i32_0 = arith.constant 0 : i32
    return %arg0, %c0_i32, %1 : i32, i32, i32
  }
  func.func @transform_1(%arg0: i32, %arg1: i32, %arg2: i32) -> (i32, i32, i32) {
    %c1_i32 = arith.constant 1 : i32
    %0 = arith.muli %arg1, %c1_i32 : i32
    %1 = arith.addi %0, %arg2 : i32
    %c0_i32 = arith.constant 0 : i32
    %c0_i32_0 = arith.constant 0 : i32
    return %arg0, %c0_i32, %1 : i32, i32, i32
  }
  func.func @transform_2(%arg0: i32, %arg1: i32, %arg2: i32) -> (i32, i32, i32) {
    %c1_i32 = arith.constant 1 : i32
    %0 = arith.muli %arg1, %c1_i32 : i32
    %1 = arith.addi %0, %arg2 : i32
    %c0_i32 = arith.constant 0 : i32
    %c0_i32_0 = arith.constant 0 : i32
    return %arg0, %c0_i32, %1 : i32, i32, i32
  }
  func.func @transform_3(%arg0: i32, %arg1: i32, %arg2: i32) -> (i32, i32, i32) {
    %c0_i32 = arith.constant 0 : i32
    %c0_i32_0 = arith.constant 0 : i32
    return %arg0, %arg1, %c0_i32 : i32, i32, i32
  }
}

</mosaic_0001>

<bundles_post_ra>
// kernel: tpu_custom_call.1
= control target key start
LH: loop header
LB: loop body
LE: loop exit
PB: predicated region body
PF: predicated region fallthrough
CT: control target
= control target key end

     0   :  { %8 = vsyncpa [#allocation3], 0  ;;  %s893_s0 = inlined_call_operand.vmem [shape: f32[2,6,256], index: 0, kind: input, shape index: {}]   ;;  %s894_s1 = inlined_call_operand.vmem [shape: f32[2,4,256], index: 1, kind: input, shape index: {}]   ;;  %s895_s2 = inlined_call_operand.vmem [shape: s32[2,1,256], index: 2, kind: input, shape index: {}]   ;;  %s896_s3 = inlined_call_operand.hbm [shape: f32[2,1,256], index: 3, kind: output, shape index: {}]  }
   0x1   :  { %10 = vsyncpa [#allocation3 + $0x1], 0  ;;  %s738_s12 = smov 0   ;;  %s740_s13 = smov 0  }
   0x2   :  { %s742_s14 = smov 0   ;;  %s744_s15 = smov 0  }
   0x3   :  { %s746_s16 = smov 0   ;;  %s748_s17 = smov 0  }
   0x4 LB: > { %s550_s18 = sadd.s32 4294967295, %s713_s17   ;;  %s551_s19 = sadd.s32 4294967294, %s713_s17   ;;  %s713_s17 = sphi %s748_s17, %s16_s17   ;;  %s709_s16 = sphi %s746_s16, %s905_s16   ;;  %s705_s15 = sphi %s744_s15, %s904_s15   ;;  %s701_s14 = sphi %s742_s14, %s903_s14   ;;  %s697_s13 = sphi %s740_s13, %s902_s13   ;;  %s693_s12 = sphi %s738_s12, %s901_s12  }
   0x5   : > { %s35_s20 = sadd.s32 1, %s709_s16  ;;  %s134_s21 = sadd.s32 1, %s701_s14 }
   0x6   : > { %p37_p0 = scmp.ge.s32.totalorder %s35_s20, 2  ;;  %p144_p1 = scmp.ne.s32.totalorder %s701_s14, %s697_s13 }
   0x7   : > { %p145_p2 = scmp.eq.s32.totalorder %s550_s18, 1  ;;  %p150_p3 = scmp.ne.s32.totalorder %s697_s13, %s693_s12 }
   0x8   : > { %s907_s20 = smov (%p37_p0, %s35_s20), 0  ;;  %p151_p5 = scmp.eq.s32.totalorder %s551_s19, 1 }
   0x9   : > { %p778_p4 = por %p145_p2, %p144_p1  ;;  %s129_s23 = ssub.s32 %s709_s16, %s907_s20 }
   0xa   : > { %p554_p6 = scmp.ge.s32.totalorder %s713_s17, 1  ;;  %p132_p7 = scmp.eq.s32.totalorder %s129_s23, 0 }
   0xb   : > { %p785_p8 = por %p151_p5, %p150_p3  ;;  %p213_p9 = scmp.lt.s32.totalorder %s713_s17, 3 }
   0xc   : > { %s791_s25 = scalar_select %p132_p7, %s701_s14, %s134_s21  }
   0xd   : > { %p214_p10 = pnand %p554_p6, %p213_p9 }
   0xe   : > { %s258_s26 = sand.u32 (!%p214_p10), 1, %s697_s13   ;;  %p263_p11 = scmp.lt.s32.totalorder (!%p214_p10), %s705_s15, 1  ;;  %v300_v0 = vlaneseq (!%p214_p10)  ;;  %v715_v2 = vmov (!%p214_p10), 0.0   ;;  %vm379_vm3 = vcmask (!%p214_p10), 1043456   ;;  %vm359_vm8 = vcmask (!%p214_p10), 1045504  }
   0xf   : > { %217 = sbr.rel (%p214_p10) target bundleno = 102 (0x66), region = 32  ;;  %s555_s27 = sshll.u32 (!%p214_p10), %s258_s26, 1 }
  0x10   : > { %vm797_vm0 = vcmp.lt.s32.totalorder (!%p214_p10), %v300_v0, 256  ;;  %s802_s29 = scalar_lea.vmem (!%p214_p10), [#allocation2], %s555_s27  ;;  %v822_v18 = vshrl.u32 (!%p214_p10), %v300_v0, 7  ;;  %s568_s23 = sshll.u32 (!%p214_p10), %s705_s15, 5 }
  0x11   : > { %304 = vst.msk [vmem:[%s802_s29] sm:$0x3] (!%p214_p10), %vm797_vm0, %v715_v2  ;;  %s438_s27 = sshll.u32 (!%p214_p10), %s802_s29, 4  ;;  %s841_s4 = scalar_lea.hbm (!%p214_p10), %s896_s3, %s568_s23  ;;  %s843_s27 = int_to_ptr.vmem [resolvable:$true] %s438_s27 }
  0x12   : > { %v347_v24 = vsub.s32 (!%p214_p10), 0, %v822_v18  ;;  %v351_v26 = vsub.s32 (!%p214_p10), 1, %v822_v18  ;;  %s422_s5 = scalar_lea.sflag (!%p214_p10), [#allocation3], %s258_s26 }
  0x16   : > { %s264_s28 = scalar_select %p263_p11, %s705_s15, 1 }
  0x17   : > { %s717_s15 = smov [#allocation2]  }
  0x18   : > { %s566_s30 = sshll.u32 %s264_s28, 4  ;;  %s560_s7 = sshll.u32 %s264_s28, 1 }
  0x19   : > { %s270_s6 = scalar_lea.vmem %s893_s0, %s566_s30  ;;  %s293_s10 = scalar_lea.vmem %s895_s2, %s560_s7 }
  0x1a   : > { %v810_v3 = vld [vmem:[%s270_s6] sm:$0x3f]  ;;  %v812_v4 = vld [vmem:[%s270_s6 + $0x8] sm:$0x3f]  ;;  %s567_s11 = sshll.u32 %s264_s28, 3  ;;  %s635_s6 = scalar_lea.vmem %s843_s27, 32 }
  0x1b   : > { %v311_v5 = vand.u32 2147483647, %v810_v3  ;;  %v312_v6 = vand.u32 2147483647, %v812_v4  ;;  %v308_v11 = vld [vmem:[%s293_s10] sm:$0x3]  ;;  %s282_s21 = scalar_lea.vmem %s894_s1, %s567_s11  ;;  %p636_p12 = scmp.ne.s32.totalorder %s843_s27, %s635_s6 }
  0x1c   : > { %vm339_vm1 = vcmp.eq.s32.totalorder %v308_v11, 255  ;;  %v307_v12 = vld [vmem:[%s282_s21] sm:$0xff]  ;;  %v309_v37 = vmax.f32 %v810_v3, 0.0  ;;  %v310_v40 = vmax.f32 %v812_v4, 0.0  ;;  %s639_s7 = sshll.u32 %s717_s15, 4  ;;  %s640_s7 = int_to_ptr.vmem [resolvable:$false] %s639_s7 }
  0x1d   : > { %v313_v7 = vsub.f32 0.0, %v311_v5  ;;  %v314_v8 = vsub.f32 0.0, %v312_v6  ;;  %v340_v14 = vsel %vm339_vm1, 6, %v308_v11  ;;  %v375_v15 = vcombine.high %v307_v12, %v307_v12  ;;  %p637_p13 = pnand %p636_p12, %p778_p4  ;;  %s641_s8 = scalar_lea.vmem %s640_s7, 64 }
  0x1e   : > { %vm341_vm2 = vcmp.ge.s32.totalorder %v340_v14, 4  ;;  %v377_v20 = vmul.f32 %v307_v12, %v810_v3  ;;  %p642_p1 = scmp.lt.s32.totalorder %s843_s27, %s640_s7  ;;  %p643_p2 = scmp.lt.s32.totalorder %s641_s8, %s635_s6 }
  0x1f   : > { %v315_v9 = vmul.f32 1.442695, %v313_v7  ;;  %v317_v10 = vmul.f32 1.442695, %v314_v8  ;;  %v378_v22 = vmul.f32 %v375_v15, %v812_v4  ;;  %v342_v25 = vsel %vm341_vm2, %v340_v14, 6  ;;  %p638_p0 = pneg %p637_p13 }
  0x20   : > { %v380_v27 = vsel %vm379_vm3, %v377_v20, 0.0  ;;  %v348_v32 = vrot.slane %v342_v25, %v347_v24  ;;  %v352_v34 = vrot.slane %v342_v25, %v351_v26  ;;  %v716_v7 = vmov 1966171168   ;;  %p644_p3 = por %p643_p2, %p642_p1 }
  0x21   : > { %627 = vpow2.f32 %v315_v9  ;;  %v387_v29 = vsel %vm379_vm3, %v378_v22, 0.0  ;;  %v381_v35 = vrot.slane %v380_v27, 4 }
  0x22   : > { %629 = vpow2.f32 %v317_v10  ;;  %v388_v36 = vrot.slane %v387_v29, 4  ;;  %vm353_vm5 = vcmp.eq.s32.totalorder %v822_v18, %v348_v32  ;;  %vm354_vm7 = vcmp.eq.s32.totalorder %v822_v18, %v352_v34  ;;  %p645_p5 = pnand %p644_p3, %p638_p0 }
  0x23   : > { %v382_v44 = vadd.f32 %v381_v35, %v380_v27  ;;  %v355_v48 = vsel %vm353_vm5, %v810_v3, 0.0  ;;  %v356_v51 = vsel %vm354_vm7, %v812_v4, 0.0  ;;  %v401_v4 = vunpack.c.l.s4 %v716_v7 }
  0x24   : > { %v389_v46 = vadd.f32 %v388_v36, %v387_v29 }
  0x25   : > { %v383_v53 = vrot.slane %v382_v44, 2  ;;  %v402_v14 = vunpack.c.0.s8 %v401_v4 }
  0x26   : > { %v390_v55 = vrot.slane %v389_v46, 2 }
  0x27   : > { %v384_v60 = vadd.f32 %v383_v53, %v382_v44  ;;  %v405_v20 = vsub.s32 %v402_v14, %v822_v18 }
  0x28   : > { %v391_v62 = vadd.f32 %v390_v55, %v389_v46 }
  0x29   : > { %v385_v3 = vrot.slane %v384_v60, 1 }
  0x2a   : > { %v392_v6 = vrot.slane %v391_v62, 1 }
  0x2b   : > { %v628_v13 = vpop.eup %627  ;;  %v386_v11 = vadd.f32 %v385_v3, %v384_v60 }
  0x2c   : > { %v630_v16 = vpop.eup %629  ;;  %v319_v17 = vadd.f32 1.0, %v628_v13  ;;  %v322_v21 = vmul.f32 -0.5, %v628_v13  ;;  %v325_v30 = vand.u32 2147483647, %v628_v13 }
  0x2d   : > { %v328_v19 = vadd.f32 1.0, %v630_v16  ;;  %v331_v23 = vmul.f32 -0.5, %v630_v16  ;;  %v334_v33 = vand.u32 2147483647, %v630_v16 }
  0x2e   : > { %631 = vlog2.f32 %v319_v17  ;;  %v323_v28 = vadd.f32 1.0, %v322_v21  ;;  %vm326_vm4 = vcmp.lt.f32.partialorder %v325_v30, 0.0004427343 }
  0x2f   : > { %633 = vlog2.f32 %v328_v19  ;;  %v332_v31 = vadd.f32 1.0, %v331_v23  ;;  %vm335_vm6 = vcmp.lt.f32.partialorder %v334_v33, 0.0004427343  ;;  %v396_v23 = vld [vmem:[%s802_s29] sm:$0x3] }
  0x30   : > { %v324_v38 = vmul.f32 %v628_v13, %v323_v28  ;;  %v393_v13 = vadd.f32 %v392_v6, %v391_v62 }
  0x31   : > { %v333_v41 = vmul.f32 %v630_v16, %v332_v31 }
  0x38   : > { %v632_v39 = vpop.eup %631 }
  0x39   : > { %v634_v42 = vpop.eup %633  ;;  %v321_v43 = vmul.f32 0.6931472, %v632_v39 }
  0x3a   : > { %v330_v45 = vmul.f32 0.6931472, %v634_v42 }
  0x3b   : > { %v327_v47 = vsel %vm326_vm4, %v324_v38, %v321_v43 }
  0x3c   : > { %v336_v49 = vsel %vm335_vm6, %v333_v41, %v330_v45  ;;  %v337_v50 = vadd.f32 %v327_v47, %v309_v37 }
  0x3d   : > { %v338_v52 = vadd.f32 %v336_v49, %v310_v40 }
  0x3e   : > { %v357_v54 = vsub.f32 %v337_v50, %v355_v48 }
  0x3f   : > { %v358_v56 = vsub.f32 %v338_v52, %v356_v51 }
  0x40   : > { %v360_v57 = vsel %vm359_vm8, %v357_v54, 0.0 }
  0x41   : > { %v361_v58 = vrot.slane %v360_v57, 4  ;;  %v367_v59 = vsel %vm359_vm8, %v358_v56, 0.0 }
  0x42   : > { %v368_v61 = vrot.slane %v367_v59, 4 }
  0x43   : > { %v362_v63 = vadd.f32 %v361_v58, %v360_v57 }
  0x44   : > { %v369_v0 = vadd.f32 %v368_v61, %v367_v59 }
  0x45   : > { %v363_v2 = vrot.slane %v362_v63, 2 }
  0x46   : > { %v370_v5 = vrot.slane %v369_v0, 2 }
  0x47   : > { %v364_v8 = vadd.f32 %v363_v2, %v362_v63 }
  0x48   : > { %v371_v9 = vadd.f32 %v370_v5, %v369_v0 }
  0x49   : > { %v365_v10 = vrot.slane %v364_v8, 1 }
  0x4a   : > { %v372_v12 = vrot.slane %v371_v9, 1 }
  0x4b   : > { %v366_v15 = vadd.f32 %v365_v10, %v364_v8 }
  0x4c   : > { %v373_v16 = vadd.f32 %v372_v12, %v371_v9 }
  0x4d   : > { %v394_v17 = vsub.f32 %v366_v15, %v386_v11 }
  0x4e   : > { %v395_v19 = vsub.f32 %v373_v16, %v393_v13 }
  0x50   : > { %v399_v21 = vcombine.low %v394_v17, %v395_v19 }
  0x52   : > { %v406_v22 = vrot.slane %v399_v21, %v405_v20 }
  0x54   : > { %v413_v24 = vrot.slane %v406_v22, %v405_v20 }
  0x56   : > { %v415_v25 = vadd.f32 %v413_v24, %v396_v23 }
  0x58   : > { %420 = vst.msk [vmem:[%s802_s29] sm:$0x3] %vm797_vm0, %v415_v25 }
  0x59   : > { %648 = shalt.err (!%p645_p5)
}
  0x5a   : > { %s649_s26 = scalar_lea.hbm %s841_s4, 32  ;;  %s653_s10 = scalar_lea.hbm %s896_s3, 64 }
  0x5b   : > { %p650_p6 = scmp.ne.s32.totalorder %s841_s4, %s649_s26  ;;  %p654_p10 = scmp.lt.u32.totalorder %s841_s4, %s896_s3 }
  0x5c   : > { %p655_p11 = scmp.lt.u32.totalorder %s653_s10, %s649_s26  ;;  %p657_p13 = scmp.lt.u32.totalorder %s649_s26, %s841_s4 }
  0x5d   : > { %p651_p7 = pnand %p650_p6, %p778_p4 }
  0x5e   : > { %p656_p12 = por %p655_p11, %p654_p10 }
  0x5f   : > { %p652_p9 = pneg %p651_p7 }
  0x60   : > { %p658_p0 = por %p657_p13, %p656_p12 }
  0x62   : > { %p659_p1 = pnand %p658_p0, %p652_p9 }
  0x64   : > { %662 = shalt.err (!%p659_p1)
}
  0x65   : > { %569 = dma.vmem_to_hbm [thread:$0]  (%p778_p4), %s843_s27, 32, %s841_s4, %s422_s5  }
  0x66 PF: > { %p575_p2 = scmp.ge.s32.totalorder %s713_s17, 2  ;;  %s450_s19 = sand.u32 1, %s693_s12  }
  0x67   : > { %s451_s21 = scalar_lea.sflag [#allocation3], %s450_s19 }
  0x68   : > { %p572_p3 = pnand %p575_p2, %p785_p8 }
  0x6a   : > { %688 = dma.done.wait (!%p572_p3), %s451_s21, 32  }
  0x6b   : > { %690 = vsyncadd (!%p572_p3), %s451_s21, 4294967264  ;;  %s16_s17 = sadd.s32 1, %s713_s17   ;;  %s901_s12 = smov %s697_s13 }
  0x6c   : > { %p13_p5 = scmp.ge.s32.totalorder %s16_s17, 4   ;;  %s902_s13 = smov %s701_s14 }
  0x6d   : > { %s903_s14 = smov %s791_s25  ;;  %s904_s15 = smov %s709_s16 }
  0x6e   : > { %s905_s16 = smov %s907_s20  ;;  %15 = sbr.rel (!%p13_p5) target bundleno = 4 (0x4), region = 77 }
  0x75   :  { %456 = vsyncpa [#allocation3], 1 }
  0x76   :  { %458 = vsyncpa [#allocation3 + $0x1], 1 }

</bundles_post_ra>
